<compile_context>
chip_gen: v7x
topology: tpu7x:2x2x1
jax: 0.10.0
libtpu: 0.0.40
codegen_flags: <defaults>
</compile_context>

<pallas_src>
import functools

import jax
import jax.numpy as jnp
import numpy as np
from jax.experimental import pallas as pl
from jax.experimental.pallas import tpu as pltpu

_BN_EPS = 1e-5


# --------------------------------------------------------------------------
# Pass 1: masked conv (MXU matmul) + partial-conv renormalization
#         + per-tile BatchNorm statistics.
# --------------------------------------------------------------------------
def _pass1_kernel(xcol_ref, mcnt_ref, w_ref, pre_ref, sum_ref, sumsq_ref):
    """Blocks:
        xcol_ref  : (K, T)       im2col of (x * mask), K = 9*Cin, channel-major
        mcnt_ref  : (1, T)       mask-conv output (3x3xCin box-sum of the mask)
        w_ref     : (Cout, K)    conv weight, flattened (cin, ky, kx)
      Outputs:
        pre_ref   : (Cout, T)    pre-BN partial-conv output (lane-dense)
        sum_ref   : (1, Cout, 1) per-tile per-channel sum
        sumsq_ref : (1, Cout, 1) per-tile per-channel sum of squares
    """
    xcol = xcol_ref[...]
    w = w_ref[...]

    # output = input_conv(input_x * mask) -- (Cout, K) @ (K, T) on the MXU,
    # producing a (Cout, T) tile whose last dim is a multiple of 128.
    conv = jnp.dot(w, xcol, preferred_element_type=jnp.float32)

    # output_mask == mask-patch sum (same value for every output channel).
    mcnt = mcnt_ref[...]                       # (1, T)
    mask_is_zero = mcnt == 0.0                 # exact: mask is binary, sum is int-valued
    denom = jnp.where(mask_is_zero, 1.0, mcnt)

    # bias=False => (output - 0) / mask_sum + 0, then masked_fill(0).
    out = jnp.where(mask_is_zero, 0.0, conv / denom)
    pre_ref[...] = out

    # Per-tile BN statistics (padded columns are exactly zero -> no effect on
    # the sums; the wrapper divides by the true element count).
    s = jnp.sum(out, axis=1, keepdims=True)          # (Cout, 1)
    ss = jnp.sum(out * out, axis=1, keepdims=True)   # (Cout, 1)
    sum_ref[...] = s[None, :, :]
    sumsq_ref[...] = ss[None, :, :]


# --------------------------------------------------------------------------
# Pass 2: BatchNorm (precomputed global scale/shift) + ReLU, in place.
# --------------------------------------------------------------------------
def _pass2_kernel(pre_ref, scale_ref, shift_ref, out_ref):
    """pre_ref/out_ref: (Cout, T); scale_ref/shift_ref: (Cout, 1)."""
    out_ref[...] = jnp.maximum(
        pre_ref[...] * scale_ref[...] + shift_ref[...], 0.0
    )


# --------------------------------------------------------------------------
# Host-side glue (layout only, no heavy compute).
# --------------------------------------------------------------------------
def _round_up(a, b):
    return (a + b - 1) // b * b


def _im2col_cmajor(x_nchw):
    """3x3, stride 1, pad 1 im2col in channel-major layout.

    Returns (K, N*H*W) with K ordered (cin, ky, kx) -- matching
    weight.reshape(Cout, Cin*3*3) -- and columns ordered (n, h, w).
    """
    n, c, h, w = x_nchw.shape
    xp = jnp.pad(x_nchw, ((0, 0), (0, 0), (1, 1), (1, 1)))
    patches = jnp.stack(
        [xp[:, :, ky:ky + h, kx:kx + w] for ky in range(3) for kx in range(3)],
        axis=2,
    )                                        # (N, C, 9, H, W)
    patches = patches.reshape(n, c * 9, h * w)
    return jnp.transpose(patches, (1, 0, 2)).reshape(c * 9, n * h * w)


def partial2d_conv(x_nchw, mask_nchw, weight_oikk, *, block_rows=512):
    """Forward pass of Partial2DConv (sample='none-3', bias=False, bn=True,
    act='ReLU', drop=0.0).  Inputs/outputs are NCHW like the PyTorch module."""
    n, cin, h, w = x_nchw.shape
    cout = weight_oikk.shape[0]
    k_dim = 9 * cin

    x = x_nchw.astype(jnp.float32)
    m = mask_nchw.astype(jnp.float32)

    nhw = n * h * w
    tile = max(128, min(_round_up(block_rows, 128), _round_up(nhw, 128)))
    nhw_pad = _round_up(nhw, tile)
    num_tiles = nhw_pad // tile

    # Apply the mask once, then im2col the product (im2col(x) * im2col(m)
    # == im2col(x * m) elementwise, so one stream suffices).
    xcol = _im2col_cmajor(x * m)                               # (K, NHW)

    # mask_conv(mask) with all-ones (Cout,Cin,3,3) filters == 3x3 box-sum of
    # the channel-summed mask (identical value for every output channel).
    msum = jnp.sum(m, axis=1)                                  # (N, H, W)
    msum_p = jnp.pad(msum, ((0, 0), (1, 1), (1, 1)))
    mcnt = jnp.zeros_like(msum)
    for ky in range(3):
        for kx in range(3):
            mcnt = mcnt + msum_p[:, ky:ky + h, kx:kx + w]
    mcnt_flat = mcnt.reshape(1, nhw)

    # Pad the NHW axis with zeros so every grid step is a full tile (zero
    # columns produce exactly-zero outputs and do not perturb the BN stats).
    pad = nhw_pad - nhw
    xcol = jnp.pad(xcol, ((0, 0), (0, pad)))
    mcnt_flat = jnp.pad(mcnt_flat, ((0, 0), (0, pad)))

    # PyTorch weight (Cout, Cin, 3, 3) -> (Cout, K), K ordered (cin, ky, kx).
    w_flat = weight_oikk.reshape(cout, k_dim).astype(jnp.float32)

    compiler_params = pltpu.CompilerParams(
        dimension_semantics=("parallel",),     # v7x: shard grid across 2 TCs
        vmem_limit_bytes=32 * 1024 * 1024,     # safe on v5e/v6e/v7x
    )

    # ---- Pass 1: conv + renorm, streaming over NHW tiles -------------------
    pre_bn, tile_sums, tile_sumsqs = pl.pallas_call(
        _pass1_kernel,
        grid=(num_tiles,),
        out_shape=(
            jax.ShapeDtypeStruct((cout, nhw_pad), jnp.float32),
            jax.ShapeDtypeStruct((num_tiles, cout, 1), jnp.float32),
            jax.ShapeDtypeStruct((num_tiles, cout, 1), jnp.float32),
        ),
        in_specs=[
            pl.BlockSpec((k_dim, tile), lambda i: (0, i)),
            pl.BlockSpec((1, tile), lambda i: (0, i)),
            pl.BlockSpec((cout, k_dim), lambda i: (0, 0)),   # weight resident
        ],
        out_specs=(
            pl.BlockSpec((cout, tile), lambda i: (0, i)),
            pl.BlockSpec((1, cout, 1), lambda i: (i, 0, 0)),
            pl.BlockSpec((1, cout, 1), lambda i: (i, 0, 0)),
        ),
        compiler_params=compiler_params,
    )(xcol, mcnt_flat, w_flat)

    # ---- Finalize global BatchNorm statistics (tiny) -----------------------
    s = jnp.sum(tile_sums, axis=(0, 2))                       # (Cout,)
    ss = jnp.sum(tile_sumsqs, axis=(0, 2))                    # (Cout,)
    count = jnp.float32(nhw)                                  # real columns only
    mean = s / count
    var = jnp.maximum(ss / count - mean * mean, 0.0)          # biased variance
    scale = jax.lax.rsqrt(var + _BN_EPS)                      # gamma = 1
    shift = -mean * scale                                     # beta = 0
    scale2 = scale.reshape(cout, 1)
    shift2 = shift.reshape(cout, 1)

    # ---- Pass 2: normalize + ReLU, in place ---------------------------------
    out_flat = pl.pallas_call(
        _pass2_kernel,
        grid=(num_tiles,),
        out_shape=jax.ShapeDtypeStruct((cout, nhw_pad), jnp.float32),
        in_specs=[
            pl.BlockSpec((cout, tile), lambda i: (0, i)),
            pl.BlockSpec((cout, 1), lambda i: (0, 0)),
            pl.BlockSpec((cout, 1), lambda i: (0, 0)),
        ],
        out_specs=pl.BlockSpec((cout, tile), lambda i: (0, i)),
        input_output_aliases={0: 0},          # reuse the pre_bn buffer in place
        compiler_params=compiler_params,
    )(pre_bn, scale2, shift2)

    # Dropout2d(p=0.0) is the identity.
    out = out_flat[:, :nhw].reshape(cout, n, h, w).transpose(1, 0, 2, 3)

    # Updated mask: a single per-pixel bit broadcast over Cout.
    nm = (mcnt > 0.0).astype(jnp.float32)                     # (N, H, W)
    new_mask = jnp.broadcast_to(nm[:, None, :, :], (n, cout, h, w))
    return out, new_mask


# --------------------------------------------------------------------------
# Pure-JAX reference (sanity check only).
# --------------------------------------------------------------------------
def _reference(x, mask, weight):
    dn = jax.lax.conv_dimension_numbers(
        x.shape, weight.shape, ("NCHW", "OIHW", "NCHW"))
    conv = jax.lax.conv_general_dilated(
        x * mask, weight, (1, 1), ((1, 1), (1, 1)), dimension_numbers=dn,
        precision=jax.lax.Precision.HIGHEST)
    msum = jax.lax.conv_general_dilated(
        mask, jnp.ones_like(weight), (1, 1), ((1, 1), (1, 1)),
        dimension_numbers=dn, precision=jax.lax.Precision.HIGHEST)
    zero = msum == 0.0
    out = jnp.where(zero, 0.0, conv / jnp.where(zero, 1.0, msum))
    new_mask = jnp.where(zero, 0.0, jnp.ones_like(out))
    mean = jnp.mean(out, axis=(0, 2, 3), keepdims=True)
    var = jnp.mean(jnp.square(out - mean), axis=(0, 2, 3), keepdims=True)
    out = jnp.maximum((out - mean) * jax.lax.rsqrt(var + _BN_EPS), 0.0)
    return out, new_mask


if __name__ == "__main__":
    # Small shapes consistent with the module: batch=2, Cin=4, Cout=8, 16x16.
    N, CIN, COUT, H, W = 2, 4, 8, 16, 16
    key = jax.random.PRNGKey(0)
    kx, km, kw = jax.random.split(key, 3)

    x = jax.random.normal(kx, (N, CIN, H, W), dtype=jnp.float32)

    # Binary mask with a fully-zero interior block so the mask_is_zero /
    # masked_fill path is exercised.
    mask = (jax.random.uniform(km, (N, CIN, H, W)) > 0.3).astype(jnp.float32)
    mask = mask.at[:, :, 5:11, 5:11].set(0.0)

    # kaiming_normal_(a=0, mode='fan_in') init: std = sqrt(2 / (Cin*KH*KW)).
    fan_in = CIN * 3 * 3
    weight = jax.random.normal(kw, (COUT, CIN, 3, 3), dtype=jnp.float32) * jnp.sqrt(
        2.0 / fan_in
    )

    # block_rows=128 => NHW=512 splits into a 4-step grid, exercising the
    # tiled two-pass (stat-accumulate then normalize) path.
    fwd = jax.jit(functools.partial(partial2d_conv, block_rows=128))
    out, new_mask = fwd(x, mask, weight)
    jax.block_until_ready((out, new_mask))

    assert out.shape == (N, COUT, H, W)
    assert new_mask.shape == (N, COUT, H, W)

    # Sanity check vs. plain-XLA reference (loose tol absorbs MXU f32-pass
    # rounding differences).
    ref_out, ref_mask = _reference(x, mask, weight)
    assert np.array_equal(np.asarray(new_mask), np.asarray(ref_mask))
    assert np.allclose(np.asarray(out), np.asarray(ref_out), atol=5e-2, rtol=5e-2)

    print("KERNEL_OK")
</pallas_src>

<mosaic_0001>
module attributes {stable_mosaic.version = 11 : i64} {
  func.func @_pass1_kernel(%arg0: i32, %arg1: memref<36x128xf32, #tpu.memory_space<vmem>>, %arg2: memref<1x128xf32, #tpu.memory_space<vmem>>, %arg3: memref<8x36xf32, #tpu.memory_space<vmem>>, %arg4: memref<8x128xf32, #tpu.memory_space<vmem>>, %arg5: memref<1x8x1xf32, #tpu.memory_space<vmem>>, %arg6: memref<1x8x1xf32, #tpu.memory_space<vmem>>) attributes {dimension_semantics = [#tpu.dimension_semantics<parallel>], iteration_bounds = array<i64: 4>, scalar_prefetch = 0 : i64, scratch_operands = 0 : i64, tpu.core_type = #tpu.core_type<tc>, window_params = [{transform_indices = @transform_0, window_bounds = array<i64: 36, 128>}, {transform_indices = @transform_1, window_bounds = array<i64: 1, 128>}, {pipeline_mode = #tpu.pipeline_mode<synchronous>, transform_indices = @transform_2, window_bounds = array<i64: 8, 36>}, {transform_indices = @transform_3, window_bounds = array<i64: 8, 128>}, {transform_indices = @transform_4, window_bounds = array<i64: 1, 8, 1>}, {transform_indices = @transform_5, window_bounds = array<i64: 1, 8, 1>}]} {
    %c0 = arith.constant 0 : index
    %c0_0 = arith.constant 0 : index
    %0 = vector.load %arg1[%c0, %c0_0] : memref<36x128xf32, #tpu.memory_space<vmem>>, vector<36x128xf32>
    %c0_1 = arith.constant 0 : index
    %c0_2 = arith.constant 0 : index
    %1 = vector.load %arg3[%c0_1, %c0_2] : memref<8x36xf32, #tpu.memory_space<vmem>>, vector<8x36xf32>
    %cst = arith.constant dense<0.000000e+00> : vector<8x128xf32>
    %2 = tpu.matmul %1, %0, %cst {dimension_numbers = #tpu.dot_dimension_numbers<[1], [0], [0], [1], [0, 0, 1, 1], [], []>} : vector<8x36xf32>, vector<36x128xf32>, vector<8x128xf32> -> vector<8x128xf32>
    %c0_3 = arith.constant 0 : index
    %c0_4 = arith.constant 0 : index
    %3 = vector.load %arg2[%c0_3, %c0_4] : memref<1x128xf32, #tpu.memory_space<vmem>>, vector<1x128xf32>
    %cst_5 = arith.constant 0.000000e+00 : f32
    %4 = vector.broadcast %cst_5 : f32 to vector<1x128xf32>
    %5 = arith.cmpf oeq, %3, %4 : vector<1x128xf32>
    %cst_6 = arith.constant 1.000000e+00 : f32
    %6 = vector.broadcast %cst_6 : f32 to vector<1x128xf32>
    %7 = arith.select %5, %6, %3 : vector<1x128xi1>, vector<1x128xf32>
    %8 = vector.broadcast %7 : vector<1x128xf32> to vector<8x128xf32>
    %9 = arith.divf %2, %8 : vector<8x128xf32>
    %cst_7 = arith.constant 0.000000e+00 : f32
    %10 = vector.shape_cast %5 : vector<1x128xi1> to vector<1x128xi1>
    %11 = vector.broadcast %10 : vector<1x128xi1> to vector<8x128xi1>
    %12 = vector.broadcast %cst_7 : f32 to vector<8x128xf32>
    %13 = arith.select %11, %12, %9 : vector<8x128xi1>, vector<8x128xf32>
    %c0_8 = arith.constant 0 : index
    %c0_9 = arith.constant 0 : index
    %14 = vector.load %arg4[%c0_8, %c0_9] : memref<8x128xf32, #tpu.memory_space<vmem>>, vector<8x128xf32>
    tpu.vector_store %arg4[%c0_8, %c0_9], %13 {strides = array<i32>} : memref<8x128xf32, #tpu.memory_space<vmem>>, vector<8x128xf32>,
    %cst_10 = arith.constant dense<0.000000e+00> : vector<8xf32>
    %15 = vector.multi_reduction <add>, %13, %cst_10 [1] : vector<8x128xf32> to vector<8xf32>
    %16 = vector.shape_cast %15 : vector<8xf32> to vector<8x1xf32>
    %17 = arith.mulf %13, %13 : vector<8x128xf32>
    %cst_11 = arith.constant dense<0.000000e+00> : vector<8xf32>
    %18 = vector.multi_reduction <add>, %17, %cst_11 [1] : vector<8x128xf32> to vector<8xf32>
    %19 = vector.shape_cast %18 : vector<8xf32> to vector<8x1xf32>
    %20 = vector.shape_cast %16 : vector<8x1xf32> to vector<1x8x1xf32>
    %c0_12 = arith.constant 0 : index
    %c0_13 = arith.constant 0 : index
    %c0_14 = arith.constant 0 : index
    %21 = vector.load %arg5[%c0_12, %c0_13, %c0_14] : memref<1x8x1xf32, #tpu.memory_space<vmem>>, vector<1x8x1xf32>
    tpu.vector_store %arg5[%c0_12, %c0_13, %c0_14], %20 {strides = array<i32>} : memref<1x8x1xf32, #tpu.memory_space<vmem>>, vector<1x8x1xf32>,
    %22 = vector.shape_cast %19 : vector<8x1xf32> to vector<1x8x1xf32>
    %c0_15 = arith.constant 0 : index
    %c0_16 = arith.constant 0 : index
    %c0_17 = arith.constant 0 : index
    %23 = vector.load %arg6[%c0_15, %c0_16, %c0_17] : memref<1x8x1xf32, #tpu.memory_space<vmem>>, vector<1x8x1xf32>
    tpu.vector_store %arg6[%c0_15, %c0_16, %c0_17], %22 {strides = array<i32>} : memref<1x8x1xf32, #tpu.memory_space<vmem>>, vector<1x8x1xf32>,
    return
  }
  func.func @transform_0(%arg0: i32) -> (i32, i32) {
    %c0_i32 = arith.constant 0 : i32
    %c0_i32_0 = arith.constant 0 : i32
    return %c0_i32, %arg0 : i32, i32
  }
  func.func @transform_1(%arg0: i32) -> (i32, i32) {
    %c0_i32 = arith.constant 0 : i32
    %c0_i32_0 = arith.constant 0 : i32
    return %c0_i32, %arg0 : i32, i32
  }
  func.func @transform_2(%arg0: i32) -> (i32, i32) {
    %c0_i32 = arith.constant 0 : i32
    %c0_i32_0 = arith.constant 0 : i32
    %c0_i32_1 = arith.constant 0 : i32
    return %c0_i32, %c0_i32_0 : i32, i32
  }
  func.func @transform_3(%arg0: i32) -> (i32, i32) {
    %c0_i32 = arith.constant 0 : i32
    %c0_i32_0 = arith.constant 0 : i32
    return %c0_i32, %arg0 : i32, i32
  }
  func.func @transform_4(%arg0: i32) -> (i32, i32, i32) {
    %c0_i32 = arith.constant 0 : i32
    %c0_i32_0 = arith.constant 0 : i32
    %c0_i32_1 = arith.constant 0 : i32
    return %arg0, %c0_i32, %c0_i32_0 : i32, i32, i32
  }
  func.func @transform_5(%arg0: i32) -> (i32, i32, i32) {
    %c0_i32 = arith.constant 0 : i32
    %c0_i32_0 = arith.constant 0 : i32
    %c0_i32_1 = arith.constant 0 : i32
    return %arg0, %c0_i32, %c0_i32_0 : i32, i32, i32
  }
}

module attributes {stable_mosaic.version = 11 : i64} {
  func.func @_pass2_kernel(%arg0: i32, %arg1: memref<8x128xf32, #tpu.memory_space<vmem>>, %arg2: memref<8x1xf32, #tpu.memory_space<vmem>>, %arg3: memref<8x1xf32, #tpu.memory_space<vmem>>, %arg4: memref<8x128xf32, #tpu.memory_space<vmem>>) attributes {dimension_semantics = [#tpu.dimension_semantics<parallel>], iteration_bounds = array<i64: 4>, scalar_prefetch = 0 : i64, scratch_operands = 0 : i64, tpu.core_type = #tpu.core_type<tc>, window_params = [{transform_indices = @transform_0, window_bounds = array<i64: 8, 128>}, {pipeline_mode = #tpu.pipeline_mode<synchronous>, transform_indices = @transform_1, window_bounds = array<i64: 8, 1>}, {pipeline_mode = #tpu.pipeline_mode<synchronous>, transform_indices = @transform_2, window_bounds = array<i64: 8, 1>}, {transform_indices = @transform_3, window_bounds = array<i64: 8, 128>}]} {
    %c0 = arith.constant 0 : index
    %c0_0 = arith.constant 0 : index
    %0 = vector.load %arg1[%c0, %c0_0] : memref<8x128xf32, #tpu.memory_space<vmem>>, vector<8x128xf32>
    %c0_1 = arith.constant 0 : index
    %c0_2 = arith.constant 0 : index
    %1 = vector.load %arg2[%c0_1, %c0_2] : memref<8x1xf32, #tpu.memory_space<vmem>>, vector<8x1xf32>
    %2 = vector.broadcast %1 : vector<8x1xf32> to vector<8x128xf32>
    %3 = arith.mulf %0, %2 : vector<8x128xf32>
    %c0_3 = arith.constant 0 : index
    %c0_4 = arith.constant 0 : index
    %4 = vector.load %arg3[%c0_3, %c0_4] : memref<8x1xf32, #tpu.memory_space<vmem>>, vector<8x1xf32>
    %5 = vector.broadcast %4 : vector<8x1xf32> to vector<8x128xf32>
    %6 = arith.addf %3, %5 : vector<8x128xf32>
    %cst = arith.constant 0.000000e+00 : f32
    %7 = vector.broadcast %cst : f32 to vector<8x128xf32>
    %8 = arith.maximumf %6, %7 : vector<8x128xf32>
    %c0_5 = arith.constant 0 : index
    %c0_6 = arith.constant 0 : index
    %9 = vector.load %arg4[%c0_5, %c0_6] : memref<8x128xf32, #tpu.memory_space<vmem>>, vector<8x128xf32>
    tpu.vector_store %arg4[%c0_5, %c0_6], %8 {strides = array<i32>} : memref<8x128xf32, #tpu.memory_space<vmem>>, vector<8x128xf32>,
    return
  }
  func.func @transform_0(%arg0: i32) -> (i32, i32) {
    %c0_i32 = arith.constant 0 : i32
    %c0_i32_0 = arith.constant 0 : i32
    return %c0_i32, %arg0 : i32, i32
  }
  func.func @transform_1(%arg0: i32) -> (i32, i32) {
    %c0_i32 = arith.constant 0 : i32
    %c0_i32_0 = arith.constant 0 : i32
    %c0_i32_1 = arith.constant 0 : i32
    return %c0_i32, %c0_i32_0 : i32, i32
  }
  func.func @transform_2(%arg0: i32) -> (i32, i32) {
    %c0_i32 = arith.constant 0 : i32
    %c0_i32_0 = arith.constant 0 : i32
    %c0_i32_1 = arith.constant 0 : i32
    return %c0_i32, %c0_i32_0 : i32, i32
  }
  func.func @transform_3(%arg0: i32) -> (i32, i32) {
    %c0_i32 = arith.constant 0 : i32
    %c0_i32_0 = arith.constant 0 : i32
    return %c0_i32, %arg0 : i32, i32
  }
}

</mosaic_0001>

<bundles_post_ra>
// kernel: mul.20
= control target key start
LH: loop header
LB: loop body
LE: loop exit
PB: predicated region body
PF: predicated region fallthrough
CT: control target
= control target key end

     0   :  { %s34_s0 = inlined_call_operand.vmem [shape: f32[8,1], index: 0, kind: input, shape index: {}]   ;;  %s35_s1 = inlined_call_operand.vmem [shape: f32[8,1], index: 1, kind: input, shape index: {}]   ;;  %s36_s2 = inlined_call_operand.vmem [shape: f32[8,1], index: 2, kind: output, shape index: {}]  }
   0x1   :  { %v3_v0 = vld [vmem:[%s34_s0] sm:$0xff] }
   0x2   :  { %v4_v1 = vld [vmem:[%s35_s1] sm:$0xff] }
   0x3   :  { %v7_v2 = vmul.f32 %v4_v1, %v3_v0 }
   0x5   :  { %9 = vst [vmem:[%s36_s2] sm:$0xff] %v7_v2 }

// kernel: partial2d_conv.3
= control target key start
LH: loop header
LB: loop body
LE: loop exit
PB: predicated region body
PF: predicated region fallthrough
CT: control target
= control target key end

     0   :  { %s284_s12 = smov 0   ;;  %s301_s0 = inlined_call_operand.vmem [shape: f32[8,512], index: 0, kind: input, shape index: {}, may-alias: {0,3}]   ;;  %s302_s1 = inlined_call_operand.vmem [shape: f32[8,1], index: 1, kind: input, shape index: {}]   ;;  %s303_s2 = inlined_call_operand.vmem [shape: f32[8,1], index: 2, kind: input, shape index: {}]   ;;  %s304_s3 = inlined_call_operand.vmem [shape: f32[8,512], index: 3, kind: output, shape index: {}, may-alias: {0,3}]  }
   0x1 LB: > { %s236_s13 = sadd.s32 4294967295, %s261_s12   ;;  %p240_p0 = scmp.ge.s32.totalorder %s261_s12, 1  ;;  %s261_s12 = sphi %s284_s12, %s13_s12  }
   0x2   : > { %p136_p1 = scmp.lt.s32.totalorder %s261_s12, 5 }
   0x4   : > { %p137_p2 = pnand %p240_p0, %p136_p1 }
   0x5   : > { %v167_v0 = vld [vmem:[%s302_s1] sm:$0xff] (!%p137_p2)  ;;  %v263_v1 = vmov (!%p137_p2), 0   ;;  %p158_p3 = scmp.lt.s32.totalorder (!%p137_p2), %s236_s13, 3 }
   0x6   : > { %140 = sbr.rel (%p137_p2) target bundleno = 144 (0x90), region = 32  ;;  %254 = vset.pattern.permute.xlu0 (!%p137_p2), %v263_v1  ;;  %v174_v2 = vld [vmem:[%s303_s2] sm:$0xff] (!%p137_p2) }
   0x7   : > { %170 = vperm.xlu0 (!%p137_p2), %254, %v167_v0  }
   0xb   : > { %177 = vperm.xlu0 (!%p137_p2), %254, %v174_v2  }
   0xd   : > { %s306_s13 = smov (!%p158_p3, %s236_s13), 3 }
   0xe   : > { %s241_s18 = sshll.u32 %s306_s13, 3 }
   0xf   : > { %s161_s21 = scalar_lea.vmem %s301_s0, %s241_s18  ;;  %s165_s24 = scalar_lea.vmem %s304_s3, %s241_s18 }
  0x10   : > { %v166_v4 = vld [vmem:[%s161_s21] sm:$0xff] }
  0x86   : > { %v171_v3 = vpop.permute.xlu0 %170 }
  0x87   : > { %v173_v5 = vmul.f32 %v171_v3, %v166_v4 }
  0x8a   : > { %v178_v6 = vpop.permute.xlu0 %177 }
  0x8b   : > { %v180_v7 = vadd.f32 %v178_v6, %v173_v5 }
  0x8d   : > { %v181_v8 = vmax.f32 %v180_v7, 0.0 }
  0x8f   : > { %182 = vst [vmem:[%s165_s24] sm:$0xff] %v181_v8 }
  0x90 PF: > { %s13_s12 = sadd.s32 1, %s261_s12  }
  0x91   : > { %p10_p4 = scmp.ge.s32.totalorder %s13_s12, 6  }
  0x93   :  { %12 = sbr.rel (!%p10_p4) target bundleno = 1 (0x1), region = 62 }

// kernel: partial2d_conv.2
= control target key start
LH: loop header
LB: loop body
LE: loop exit
PB: predicated region body
PF: predicated region fallthrough
CT: control target
= control target key end

     0   :  { %s677_s18 = smov 0   ;;  %s679_s19 = smov 0   ;;  %s743_s0 = inlined_call_operand.vmem [shape: f32[36,512], index: 0, kind: input, shape index: {}]   ;;  %s744_s1 = inlined_call_operand.vmem [shape: f32[1,512], index: 1, kind: input, shape index: {}]   ;;  %s745_s2 = inlined_call_operand.vmem [shape: f32[8,36], index: 2, kind: input, shape index: {}]   ;;  %s746_s3 = inlined_call_operand.vmem [shape: f32[8,512], index: 3, kind: output, shape index: {0}]   ;;  %s747_s4 = inlined_call_operand.vmem [shape: f32[4,8,1], index: 4, kind: output, shape index: {1}]   ;;  %s748_s5 = inlined_call_operand.vmem [shape: f32[4,8,1], index: 5, kind: output, shape index: {2}]  }
   0x1   :  { %s681_s20 = smov 0  }
   0x2 LB: > { %s549_s21 = sadd.s32 4294967295, %s641_s20   ;;  %s694_s22 = sadd.s32 1, %s641_s20   ;;  %s641_s20 = sphi %s681_s20, %s751_s20   ;;  %s637_s19 = sphi %s679_s19, %s750_s19   ;;  %s633_s18 = sphi %s677_s18, %s749_s18  }
   0x3   : > { %s20_s23 = ssub.s32 %s641_s20, %s694_s22  ;;  %s23_s24 = sadd.s32 1, %s637_s19 }
   0x4   : > { %p21_p0 = scmp.eq.s32.totalorder %s20_s23, 0  ;;  %p30_p1 = scmp.ne.s32.totalorder %s637_s19, %s633_s18 }
   0x5   : > { %p31_p2 = scmp.eq.s32.totalorder %s641_s20, 0  ;;  %p552_p4 = scmp.ge.s32.totalorder %s641_s20, 4 }
   0x6   : > { %s703_s25 = scalar_select %p21_p0, %s637_s19, %s23_s24  }
   0x7   : > { %p32_p3 = por %p31_p2, %p30_p1  ;;  %184 = sbr.rel (%p552_p4) target bundleno = 23 (0x17), region = 20 }
   0xe   : > { %187 = sbr.rel (!%p32_p3) target bundleno = 23 (0x17), region = 24  ;;  %s189_s26 = sand.u32 (%p32_p3), 1, %s637_s19  }
   0xf   : > { %s553_s27 = sshll.u32 (%p32_p3), %s641_s20, 3  ;;  %s587_s28 = smul.u32 (%p32_p3), 40, %s189_s26 }
  0x10   : > { %s193_s6 = scalar_lea.vmem (%p32_p3), %s743_s0, %s553_s27 }
  0x11   : > { %v229_v0 = vld [vmem:[%s193_s6] sm:$0xff] (%p32_p3)  ;;  %s191_s7 = scalar_lea.vmem (%p32_p3), [#allocation2], %s587_s28 }
  0x12   : > { %v231_v1 = vld [vmem:[%s193_s6 + $0x20] sm:$0xff] (%p32_p3)  ;;  %230 = vst [vmem:[%s191_s7] sm:$0xff] (%p32_p3), %v229_v0 }
  0x13   : > { %v233_v2 = vld [vmem:[%s193_s6 + $0x40] sm:$0xff] (%p32_p3)  ;;  %232 = vst [vmem:[%s191_s7 + $0x8] sm:$0xff] (%p32_p3), %v231_v1 }
  0x14   : > { %v235_v3 = vld [vmem:[%s193_s6 + $0x60] sm:$0xff] (%p32_p3)  ;;  %234 = vst [vmem:[%s191_s7 + $0x10] sm:$0xff] (%p32_p3), %v233_v2 }
  0x15   : > { %v237_v4 = vld [vmem:[%s193_s6 + $0x80] sm:$0xff]  ;;  %236 = vst [vmem:[%s191_s7 + $0x18] sm:$0xff] %v235_v3 }
  0x16   : > { %238 = vst [vmem:[%s191_s7 + $0x20] sm:$0xff] %v237_v4 }
  0x17 PF: > { %p554_p5 = scmp.ge.s32.totalorder %s641_s20, 1  ;;  %p249_p6 = scmp.lt.s32.totalorder %s641_s20, 5 }
  0x19   : > { %p250_p7 = pnand %p554_p5, %p249_p6 }
  0x1a   : > { %s256_s8 = sand.u32 (!%p250_p7), 1, %s633_s18   ;;  %v643_v5 = vmov (!%p250_p7), 0.0|0.0   ;;  %vm644_vm0 = vmmov (!%p250_p7), 0   ;;  %v645_v6 = vmov (!%p250_p7), 0.0   ;;  %vm318_vm1 = vcmask (!%p250_p7), 1043456   ;;  %v313_v14 = vld [vmem:[%s745_s2] sm:$0xff] (!%p250_p7) }
  0x1b   : > { %253 = sbr.rel (%p250_p7) target bundleno = 405 (0x195), region = 66  ;;  %581 = vmatprep.subr.bf16.mxu0 (!%p250_p7), %v643_v5  ;;  %578 = vmatprep.mubr.msk.f32.mxu0 (!%p250_p7), %vm644_vm0, %v645_v6  ;;  %vm314_vm2 = vcmask (!%p250_p7), 293888   ;;  %p293_p8 = scmp.lt.s32.totalorder (!%p250_p7), %s549_s21, 3  ;;  %v396_v15 = vlaneseq (!%p250_p7)  ;;  %v646_v21 = vmov (!%p250_p7), 0   ;;  %vm416_vm5 = vcmask (!%p250_p7), 7168  }
  0x1c   : > { %s588_s9 = smul.u32 (!%p250_p7), 40, %s256_s8 }
  0x1d   : > { %v397_v17 = vshrl.u32 (!%p250_p7), %v396_v15, 7 }
  0x1e   : > { %s258_s10 = scalar_lea.vmem (!%p250_p7), [#allocation2], %s588_s9 }
  0x1f   : > { %v308_v7 = vld [vmem:[%s258_s10] sm:$0xff] (!%p250_p7)  ;;  %v309_v8 = vld [vmem:[%s258_s10 + $0x8] sm:$0xff] (!%p250_p7)  ;;  %v310_v9 = vld [vmem:[%s258_s10 + $0x10] sm:$0xff] (!%p250_p7)  ;;  %v398_v18 = vsub.s32 (!%p250_p7), 0, %v397_v17 }
  0x20   : > { %v582_v10 = vpack.c.bf16 (!%p250_p7), %v309_v8, %v308_v7  ;;  %v311_v11 = vld [vmem:[%s258_s10 + $0x18] sm:$0xff] (!%p250_p7)  ;;  %v312_v13 = vld [vmem:[%s258_s10 + $0x20] sm:$0xf] (!%p250_p7) }
  0x21   : > { %v585_v12 = vpack.c.bf16 (!%p250_p7), %v311_v11, %v310_v9 }
  0x22   : > { %583 = vmatpush3.bf16.msra.mxu0 %v582_v10  ;;  %s753_s21 = smov (!%p293_p8, %s549_s21), 3 }
  0x23   : > { %584 = vmatprep.subr.bf16.mxu0 %v643_v5  ;;  %s295_s15 = scalar_lea.vmem %s744_s1, %s753_s21  ;;  %s555_s16 = sshll.u32 %s753_s21, 3 }
  0x24   : > { %v392_v16 = vld [vmem:[%s295_s15] sm:$0x1]  ;;  %s299_s20 = scalar_lea.vmem %s746_s3, %s555_s16  ;;  %s303_s26 = scalar_lea.vmem %s747_s4, %s555_s16 }
  0x25   : > { %vm393_vm3 = vcmp.eq.f32.partialorder %v392_v16, 0.0  ;;  %s307_s28 = scalar_lea.vmem %s748_s5, %s555_s16 }
  0x26   : > { %586 = vmatpush3.bf16.msra.mxu0 %v585_v12  ;;  %v394_v19 = vsel %vm393_vm3, 1.0, %v392_v16  ;;  %v403_v22 = vsel %vm393_vm3, 1, %v646_v21 }
  0x27   : > { %576 = vmatprep.subr.mxu0 %v645_v6  ;;  %v399_v20 = vrot.slane %v394_v19, %v398_v18  ;;  %v407_v23 = vrot.slane %v403_v22, %v398_v18 }
  0x29   : > { %617 = vrcp.f32 %v399_v20  ;;  %vm408_vm4 = vcmp.eq.s32.totalorder %v407_v23, 1 }
  0x2a   : > { %577 = vmatpush3.msk.msra.mxu0 %vm318_vm1, %v312_v13 }
  0x2b   : > { %579 = vmatmul.mubr.msk.f32.vlgmr.msra.gmra.mrb[0].mxu0 %vm314_vm2, %v313_v14 }
  0x33   : > { %v618_v24 = vpop.eup %617 }
  0xfe   : > { %v388_v25 = vpop.f32.mrb[0].mxu0 }
  0xff   : > { %v402_v26 = vmul.f32 %v618_v24, %v388_v25  ;;  %v580_v27 = vpop.f32.mrb[1].mxu0 }
 0x101   : > { %v409_v28 = vsel %vm408_vm4, 0.0, %v402_v26 }
 0x102   : > { %411 = vadd.xlane.f32.xlu0 %v409_v28  ;;  %410 = vst [vmem:[%s299_s20] sm:$0xff] %v409_v28  ;;  %v413_v29 = vmul.f32 %v409_v28, %v409_v28 }
 0x106   : > { %414 = vadd.xlane.f32.xlu0 %v413_v29 }
 0x18f   : > { %v412_v30 = vpop.xlane.xlu0 %411 }
 0x190   : > { %417 = vst.msk [vmem:[%s303_s26] sm:$0xff] %vm416_vm5, %v412_v30 }
 0x193   : > { %v415_v31 = vpop.xlane.xlu0 %414 }
 0x194   : > { %418 = vst.msk [vmem:[%s307_s28] sm:$0xff] %vm416_vm5, %v415_v31 }
 0x195 PF: > { %p13_p9 = scmp.ge.s32.totalorder %s694_s22, 6   ;;  %s749_s18 = smov %s637_s19 }
 0x196   : > { %s750_s19 = smov %s703_s25  ;;  %s751_s20 = smov %s694_s22 }
 0x197   :  { %15 = sbr.rel (!%p13_p9) target bundleno = 2 (0x2), region = 132 }

</bundles_post_ra>
